<compile_context>
chip_gen: v5e
topology: v5e:2x2
jax: 0.10.0
libtpu: 0.0.40
codegen_flags: <defaults>
</compile_context>

<pallas_src>
import jax
import jax.numpy as jnp
from jax.experimental import pallas as pl
from jax.experimental.pallas import tpu as pltpu

LANE = 128  # TPU lane width


def _silu(t):
    # x * sigmoid(x), sigmoid(x) = 0.5*tanh(0.5*x) + 0.5  -> single EUP push.
    return 0.5 * t * (jnp.tanh(0.5 * t) + 1.0)


def _net_kernel(
    x_ref,
    w_in_ref, b_in_ref,
    w1_ref, b1_ref, w2_ref, b2_ref,
    w3_ref, b3_ref, w4_ref, b4_ref,
    w5_ref, b5_ref, w6_ref, b6_ref,
    w_out_ref, b_out_ref,
    o_ref,
):
    # x_ref: (rows, pack*in_w) -- `pack` samples packed into each 128-lane row.
    x = x_ref[...]

    def linear(t, w_ref, b_ref):
        # Matmul operands use the weight dtype (bf16 by default); the MXU
        # accumulates in f32, and the bias add / activations stay f32.
        return (
            jnp.dot(t.astype(w_ref.dtype), w_ref[...],
                    preferred_element_type=jnp.float32)
            + b_ref[...]
        )

    # layer_in (block-diagonal (pack*in_w, pack*W))
    y = linear(x, w_in_ref, b_in_ref)

    # residual block 1
    h = _silu(linear(y, w1_ref, b1_ref))
    y = y + _silu(linear(h, w2_ref, b2_ref))

    # residual block 2
    h = _silu(linear(y, w3_ref, b3_ref))
    y = y + _silu(linear(h, w4_ref, b4_ref))

    # residual block 3
    h = _silu(linear(y, w5_ref, b5_ref))
    y = y + _silu(linear(h, w6_ref, b6_ref))

    # layer_out via block-diagonal (pack*W, pack) weight: row r of the result
    # holds that packed row's `pack` per-sample scalars, already in the final
    # storage order -> no in-kernel sublane->lane transpose in the epilogue.
    o_ref[...] = linear(y, w_out_ref, b_out_ref).astype(o_ref.dtype)


def _block_diag(w, pack):
    """kron(I_pack, w): w replicated `pack` times along the diagonal."""
    if pack == 1:
        return w
    return jnp.kron(jnp.eye(pack, dtype=w.dtype), w)


def _auto_tile_batch(n, cap=4096):
    # >=2 grid steps so v7x can shard the "parallel" axis across both
    # TensorCores; otherwise as large as possible (v5e/v6e: single TC,
    # larger tiles amortize the ~0.35us per-grid-step overhead).
    half = ((n + 1) // 2 + LANE - 1) // LANE * LANE
    return int(max(LANE, min(cap, half)))


def net_forward(x, params, *, tile_batch=None, compute_dtype=jnp.bfloat16):
    """Run the Net forward pass with a Pallas TPU kernel.

    x:             [N, input_width] float32 (N arbitrary; zero-padded internally;
                   padded tail rows are computed and sliced off)
    params:        dict of weights ([in, out]) and biases ([1, out])
    tile_batch:    samples per grid step (multiple of 128); None -> auto
    compute_dtype: matmul-operand dtype (bf16 default; accumulation is f32).
                   Pass jnp.float32 for a bit-accurate path.
    """
    n, in_w = x.shape
    layer_width = params["w1"].shape[0]

    # Samples packed per 128-lane row (4 for layer_width=32).
    if layer_width <= LANE and LANE % layer_width == 0:
        pack = LANE // layer_width
    else:
        pack = 1

    if tile_batch is None:
        tile_batch = _auto_tile_batch(n)
    assert tile_batch % LANE == 0, "tile_batch must be a multiple of 128"

    num_tiles = -(-n // tile_batch)
    n_pad = num_tiles * tile_batch
    if n_pad != n:
        x = jnp.pad(x, ((0, n_pad - n), (0, 0)))

    rows = tile_batch // pack          # packed rows per grid step
    assert rows % 8 == 0, "tile_batch must give a sublane-aligned packed tile"
    x_packed = x.reshape(n_pad // pack, pack * in_w)

    cd = compute_dtype
    f32 = jnp.float32

    # Block-diagonal weights (built once per call) + lane-tiled biases.
    ordered = [
        _block_diag(params["w_in"], pack).astype(cd),           # (pack*in_w, pack*W)
        jnp.tile(params["b_in"], (1, pack)).astype(f32),
    ]
    for li in range(1, 7):
        ordered.append(_block_diag(params[f"w{li}"], pack).astype(cd))   # (pack*W, pack*W)
        ordered.append(jnp.tile(params[f"b{li}"], (1, pack)).astype(f32))
    ordered.append(_block_diag(params["w_out"], pack).astype(cd))        # (pack*W, pack)
    ordered.append(jnp.tile(params["b_out"], (1, pack)).astype(f32))     # (1, pack)

    def full_spec(shape):
        # Whole-array block with a constant block index: weights/biases stay
        # resident in VMEM across the grid (total ~0.25 MB even packed+bf16).
        nd = len(shape)
        return pl.BlockSpec(shape, lambda i, _nd=nd: (0,) * _nd)

    in_specs = [pl.BlockSpec((rows, pack * in_w), lambda i: (i, 0))]
    in_specs += [full_spec(p.shape) for p in ordered]
    out_specs = pl.BlockSpec((rows, pack), lambda i: (i, 0))

    out = pl.pallas_call(
        _net_kernel,
        out_shape=jax.ShapeDtypeStruct((n_pad // pack, pack), jnp.float32),
        grid_spec=pltpu.PrefetchScalarGridSpec(
            num_scalar_prefetch=0,
            grid=(num_tiles,),
            in_specs=in_specs,
            out_specs=out_specs,
        ),
        compiler_params=pltpu.CompilerParams(
            dimension_semantics=("parallel",),   # v7x: tiles shard across both TCs
            vmem_limit_bytes=32 * 1024 * 1024,   # far more than the packed footprint
        ),
    )(x_packed, *ordered)

    # Row-major flatten of (rows, pack) is exactly the original sample order.
    return out.reshape(n_pad)[:n].reshape(n, 1)


def init_params(key, input_width, layer_width):
    """Deterministic synthetic parameter init (weights stored [in, out])."""
    ks = jax.random.split(key, 16)

    def w(k, fan_in, fan_out):
        bound = 1.0 / jnp.sqrt(jnp.float32(fan_in))
        return jax.random.uniform(k, (fan_in, fan_out), jnp.float32, -bound, bound)

    def b(k, fan_in, fan_out):
        bound = 1.0 / jnp.sqrt(jnp.float32(fan_in))
        return jax.random.uniform(k, (1, fan_out), jnp.float32, -bound, bound)

    p = {}
    p["w_in"], p["b_in"] = w(ks[0], input_width, layer_width), b(ks[1], input_width, layer_width)
    for li in range(1, 7):
        p[f"w{li}"] = w(ks[2 * li], layer_width, layer_width)
        p[f"b{li}"] = b(ks[2 * li + 1], layer_width, layer_width)
    p["w_out"] = w(ks[14], layer_width, 1)
    p["b_out"] = b(ks[15], layer_width, 1)
    return p


def net_forward_ref(x, p):
    """Pure-JAX reference of the same forward pass (for verification)."""
    def silu(t):
        return t * jax.nn.sigmoid(t)

    y = x @ p["w_in"] + p["b_in"]
    y = y + silu(silu(y @ p["w1"] + p["b1"]) @ p["w2"] + p["b2"])
    y = y + silu(silu(y @ p["w3"] + p["b3"]) @ p["w4"] + p["b4"])
    y = y + silu(silu(y @ p["w5"] + p["b5"]) @ p["w6"] + p["b6"])
    return y @ p["w_out"] + p["b_out"]


if __name__ == "__main__":
    input_width = 10    # 10D problem (Train_DRM_10D)
    layer_width = 32
    batch = 300         # NOT a multiple of the tile: exercises padding + 2-step grid

    key = jax.random.PRNGKey(0)
    kx, kp = jax.random.split(key)
    x = jax.random.normal(kx, (batch, input_width), dtype=jnp.float32)
    params = init_params(kp, input_width, layer_width)

    ref = net_forward_ref(x, params)

    # Default path: bf16 MXU operands, f32 accumulation/activations.
    out_bf16 = jax.block_until_ready(net_forward(x, params))
    assert out_bf16.shape == (batch, 1)
    err_bf16 = jnp.max(jnp.abs(out_bf16 - ref))
    assert jnp.allclose(out_bf16, ref, atol=1e-1, rtol=1e-1), f"bf16 mismatch: {err_bf16}"

    # f32-operand path (bit-accurate within MXU f32 precision).
    out_f32 = jax.block_until_ready(
        net_forward(x, params, tile_batch=256, compute_dtype=jnp.float32))
    err_f32 = jnp.max(jnp.abs(out_f32 - ref))
    assert jnp.allclose(out_f32, ref, atol=2e-2, rtol=2e-2), f"f32 mismatch: {err_f32}"

    print("KERNEL_OK")
</pallas_src>

<mosaic_0001>
module attributes {stable_mosaic.version = 11 : i64} {
  func.func @_net_kernel(%arg0: i32, %arg1: memref<64x40xf32, #tpu.memory_space<vmem>>, %arg2: memref<40x128xbf16, #tpu.memory_space<vmem>>, %arg3: memref<1x128xf32, #tpu.memory_space<vmem>>, %arg4: memref<128x128xbf16, #tpu.memory_space<vmem>>, %arg5: memref<1x128xf32, #tpu.memory_space<vmem>>, %arg6: memref<128x128xbf16, #tpu.memory_space<vmem>>, %arg7: memref<1x128xf32, #tpu.memory_space<vmem>>, %arg8: memref<128x128xbf16, #tpu.memory_space<vmem>>, %arg9: memref<1x128xf32, #tpu.memory_space<vmem>>, %arg10: memref<128x128xbf16, #tpu.memory_space<vmem>>, %arg11: memref<1x128xf32, #tpu.memory_space<vmem>>, %arg12: memref<128x128xbf16, #tpu.memory_space<vmem>>, %arg13: memref<1x128xf32, #tpu.memory_space<vmem>>, %arg14: memref<128x128xbf16, #tpu.memory_space<vmem>>, %arg15: memref<1x128xf32, #tpu.memory_space<vmem>>, %arg16: memref<128x4xbf16, #tpu.memory_space<vmem>>, %arg17: memref<1x4xf32, #tpu.memory_space<vmem>>, %arg18: memref<64x4xf32, #tpu.memory_space<vmem>>) attributes {dimension_semantics = [#tpu.dimension_semantics<parallel>], iteration_bounds = array<i64: 2>, scalar_prefetch = 0 : i64, scratch_operands = 0 : i64, tpu.core_type = #tpu.core_type<tc>, window_params = [{transform_indices = @transform_0, window_bounds = array<i64: 64, 40>}, {pipeline_mode = #tpu.pipeline_mode<synchronous>, transform_indices = @transform_1, window_bounds = array<i64: 40, 128>}, {pipeline_mode = #tpu.pipeline_mode<synchronous>, transform_indices = @transform_2, window_bounds = array<i64: 1, 128>}, {pipeline_mode = #tpu.pipeline_mode<synchronous>, transform_indices = @transform_3, window_bounds = array<i64: 128, 128>}, {pipeline_mode = #tpu.pipeline_mode<synchronous>, transform_indices = @transform_4, window_bounds = array<i64: 1, 128>}, {pipeline_mode = #tpu.pipeline_mode<synchronous>, transform_indices = @transform_5, window_bounds = array<i64: 128, 128>}, {pipeline_mode = #tpu.pipeline_mode<synchronous>, transform_indices = @transform_6, window_bounds = array<i64: 1, 128>}, {pipeline_mode = #tpu.pipeline_mode<synchronous>, transform_indices = @transform_7, window_bounds = array<i64: 128, 128>}, {pipeline_mode = #tpu.pipeline_mode<synchronous>, transform_indices = @transform_8, window_bounds = array<i64: 1, 128>}, {pipeline_mode = #tpu.pipeline_mode<synchronous>, transform_indices = @transform_9, window_bounds = array<i64: 128, 128>}, {pipeline_mode = #tpu.pipeline_mode<synchronous>, transform_indices = @transform_10, window_bounds = array<i64: 1, 128>}, {pipeline_mode = #tpu.pipeline_mode<synchronous>, transform_indices = @transform_11, window_bounds = array<i64: 128, 128>}, {pipeline_mode = #tpu.pipeline_mode<synchronous>, transform_indices = @transform_12, window_bounds = array<i64: 1, 128>}, {pipeline_mode = #tpu.pipeline_mode<synchronous>, transform_indices = @transform_13, window_bounds = array<i64: 128, 128>}, {pipeline_mode = #tpu.pipeline_mode<synchronous>, transform_indices = @transform_14, window_bounds = array<i64: 1, 128>}, {pipeline_mode = #tpu.pipeline_mode<synchronous>, transform_indices = @transform_15, window_bounds = array<i64: 128, 4>}, {pipeline_mode = #tpu.pipeline_mode<synchronous>, transform_indices = @transform_16, window_bounds = array<i64: 1, 4>}, {transform_indices = @transform_17, window_bounds = array<i64: 64, 4>}]} {
    %c0 = arith.constant 0 : index
    %c0_0 = arith.constant 0 : index
    %0 = vector.load %arg1[%c0, %c0_0] : memref<64x40xf32, #tpu.memory_space<vmem>>, vector<64x40xf32>
    %1 = arith.truncf %0 : vector<64x40xf32> to vector<64x40xbf16>
    %c0_1 = arith.constant 0 : index
    %c0_2 = arith.constant 0 : index
    %2 = vector.load %arg2[%c0_1, %c0_2] : memref<40x128xbf16, #tpu.memory_space<vmem>>, vector<40x128xbf16>
    %cst = arith.constant dense<0.000000e+00> : vector<64x128xf32>
    %3 = tpu.matmul %1, %2, %cst {dimension_numbers = #tpu.dot_dimension_numbers<[1], [0], [0], [1], [0, 0, 1, 1], [], []>} : vector<64x40xbf16>, vector<40x128xbf16>, vector<64x128xf32> -> vector<64x128xf32>
    %c0_3 = arith.constant 0 : index
    %c0_4 = arith.constant 0 : index
    %4 = vector.load %arg3[%c0_3, %c0_4] : memref<1x128xf32, #tpu.memory_space<vmem>>, vector<1x128xf32>
    %5 = vector.broadcast %4 : vector<1x128xf32> to vector<64x128xf32>
    %6 = arith.addf %3, %5 : vector<64x128xf32>
    %7 = arith.truncf %6 : vector<64x128xf32> to vector<64x128xbf16>
    %c0_5 = arith.constant 0 : index
    %c0_6 = arith.constant 0 : index
    %8 = vector.load %arg4[%c0_5, %c0_6] : memref<128x128xbf16, #tpu.memory_space<vmem>>, vector<128x128xbf16>
    %cst_7 = arith.constant dense<0.000000e+00> : vector<64x128xf32>
    %9 = tpu.matmul %7, %8, %cst_7 {dimension_numbers = #tpu.dot_dimension_numbers<[1], [0], [0], [1], [0, 0, 1, 1], [], []>} : vector<64x128xbf16>, vector<128x128xbf16>, vector<64x128xf32> -> vector<64x128xf32>
    %c0_8 = arith.constant 0 : index
    %c0_9 = arith.constant 0 : index
    %10 = vector.load %arg5[%c0_8, %c0_9] : memref<1x128xf32, #tpu.memory_space<vmem>>, vector<1x128xf32>
    %11 = vector.broadcast %10 : vector<1x128xf32> to vector<64x128xf32>
    %12 = arith.addf %9, %11 : vector<64x128xf32>
    %cst_10 = arith.constant 5.000000e-01 : f32
    %13 = vector.broadcast %cst_10 : f32 to vector<64x128xf32>
    %14 = arith.mulf %13, %12 : vector<64x128xf32>
    %cst_11 = arith.constant 5.000000e-01 : f32
    %15 = vector.broadcast %cst_11 : f32 to vector<64x128xf32>
    %16 = arith.mulf %15, %12 : vector<64x128xf32>
    %17 = math.tanh %16 : vector<64x128xf32>
    %cst_12 = arith.constant 1.000000e+00 : f32
    %18 = vector.broadcast %cst_12 : f32 to vector<64x128xf32>
    %19 = arith.addf %17, %18 : vector<64x128xf32>
    %20 = arith.mulf %14, %19 : vector<64x128xf32>
    %21 = arith.truncf %20 : vector<64x128xf32> to vector<64x128xbf16>
    %c0_13 = arith.constant 0 : index
    %c0_14 = arith.constant 0 : index
    %22 = vector.load %arg6[%c0_13, %c0_14] : memref<128x128xbf16, #tpu.memory_space<vmem>>, vector<128x128xbf16>
    %cst_15 = arith.constant dense<0.000000e+00> : vector<64x128xf32>
    %23 = tpu.matmul %21, %22, %cst_15 {dimension_numbers = #tpu.dot_dimension_numbers<[1], [0], [0], [1], [0, 0, 1, 1], [], []>} : vector<64x128xbf16>, vector<128x128xbf16>, vector<64x128xf32> -> vector<64x128xf32>
    %c0_16 = arith.constant 0 : index
    %c0_17 = arith.constant 0 : index
    %24 = vector.load %arg7[%c0_16, %c0_17] : memref<1x128xf32, #tpu.memory_space<vmem>>, vector<1x128xf32>
    %25 = vector.broadcast %24 : vector<1x128xf32> to vector<64x128xf32>
    %26 = arith.addf %23, %25 : vector<64x128xf32>
    %cst_18 = arith.constant 5.000000e-01 : f32
    %27 = vector.broadcast %cst_18 : f32 to vector<64x128xf32>
    %28 = arith.mulf %27, %26 : vector<64x128xf32>
    %cst_19 = arith.constant 5.000000e-01 : f32
    %29 = vector.broadcast %cst_19 : f32 to vector<64x128xf32>
    %30 = arith.mulf %29, %26 : vector<64x128xf32>
    %31 = math.tanh %30 : vector<64x128xf32>
    %cst_20 = arith.constant 1.000000e+00 : f32
    %32 = vector.broadcast %cst_20 : f32 to vector<64x128xf32>
    %33 = arith.addf %31, %32 : vector<64x128xf32>
    %34 = arith.mulf %28, %33 : vector<64x128xf32>
    %35 = arith.addf %6, %34 : vector<64x128xf32>
    %36 = arith.truncf %35 : vector<64x128xf32> to vector<64x128xbf16>
    %c0_21 = arith.constant 0 : index
    %c0_22 = arith.constant 0 : index
    %37 = vector.load %arg8[%c0_21, %c0_22] : memref<128x128xbf16, #tpu.memory_space<vmem>>, vector<128x128xbf16>
    %cst_23 = arith.constant dense<0.000000e+00> : vector<64x128xf32>
    %38 = tpu.matmul %36, %37, %cst_23 {dimension_numbers = #tpu.dot_dimension_numbers<[1], [0], [0], [1], [0, 0, 1, 1], [], []>} : vector<64x128xbf16>, vector<128x128xbf16>, vector<64x128xf32> -> vector<64x128xf32>
    %c0_24 = arith.constant 0 : index
    %c0_25 = arith.constant 0 : index
    %39 = vector.load %arg9[%c0_24, %c0_25] : memref<1x128xf32, #tpu.memory_space<vmem>>, vector<1x128xf32>
    %40 = vector.broadcast %39 : vector<1x128xf32> to vector<64x128xf32>
    %41 = arith.addf %38, %40 : vector<64x128xf32>
    %cst_26 = arith.constant 5.000000e-01 : f32
    %42 = vector.broadcast %cst_26 : f32 to vector<64x128xf32>
    %43 = arith.mulf %42, %41 : vector<64x128xf32>
    %cst_27 = arith.constant 5.000000e-01 : f32
    %44 = vector.broadcast %cst_27 : f32 to vector<64x128xf32>
    %45 = arith.mulf %44, %41 : vector<64x128xf32>
    %46 = math.tanh %45 : vector<64x128xf32>
    %cst_28 = arith.constant 1.000000e+00 : f32
    %47 = vector.broadcast %cst_28 : f32 to vector<64x128xf32>
    %48 = arith.addf %46, %47 : vector<64x128xf32>
    %49 = arith.mulf %43, %48 : vector<64x128xf32>
    %50 = arith.truncf %49 : vector<64x128xf32> to vector<64x128xbf16>
    %c0_29 = arith.constant 0 : index
    %c0_30 = arith.constant 0 : index
    %51 = vector.load %arg10[%c0_29, %c0_30] : memref<128x128xbf16, #tpu.memory_space<vmem>>, vector<128x128xbf16>
    %cst_31 = arith.constant dense<0.000000e+00> : vector<64x128xf32>
    %52 = tpu.matmul %50, %51, %cst_31 {dimension_numbers = #tpu.dot_dimension_numbers<[1], [0], [0], [1], [0, 0, 1, 1], [], []>} : vector<64x128xbf16>, vector<128x128xbf16>, vector<64x128xf32> -> vector<64x128xf32>
    %c0_32 = arith.constant 0 : index
    %c0_33 = arith.constant 0 : index
    %53 = vector.load %arg11[%c0_32, %c0_33] : memref<1x128xf32, #tpu.memory_space<vmem>>, vector<1x128xf32>
    %54 = vector.broadcast %53 : vector<1x128xf32> to vector<64x128xf32>
    %55 = arith.addf %52, %54 : vector<64x128xf32>
    %cst_34 = arith.constant 5.000000e-01 : f32
    %56 = vector.broadcast %cst_34 : f32 to vector<64x128xf32>
    %57 = arith.mulf %56, %55 : vector<64x128xf32>
    %cst_35 = arith.constant 5.000000e-01 : f32
    %58 = vector.broadcast %cst_35 : f32 to vector<64x128xf32>
    %59 = arith.mulf %58, %55 : vector<64x128xf32>
    %60 = math.tanh %59 : vector<64x128xf32>
    %cst_36 = arith.constant 1.000000e+00 : f32
    %61 = vector.broadcast %cst_36 : f32 to vector<64x128xf32>
    %62 = arith.addf %60, %61 : vector<64x128xf32>
    %63 = arith.mulf %57, %62 : vector<64x128xf32>
    %64 = arith.addf %35, %63 : vector<64x128xf32>
    %65 = arith.truncf %64 : vector<64x128xf32> to vector<64x128xbf16>
    %c0_37 = arith.constant 0 : index
    %c0_38 = arith.constant 0 : index
    %66 = vector.load %arg12[%c0_37, %c0_38] : memref<128x128xbf16, #tpu.memory_space<vmem>>, vector<128x128xbf16>
    %cst_39 = arith.constant dense<0.000000e+00> : vector<64x128xf32>
    %67 = tpu.matmul %65, %66, %cst_39 {dimension_numbers = #tpu.dot_dimension_numbers<[1], [0], [0], [1], [0, 0, 1, 1], [], []>} : vector<64x128xbf16>, vector<128x128xbf16>, vector<64x128xf32> -> vector<64x128xf32>
    %c0_40 = arith.constant 0 : index
    %c0_41 = arith.constant 0 : index
    %68 = vector.load %arg13[%c0_40, %c0_41] : memref<1x128xf32, #tpu.memory_space<vmem>>, vector<1x128xf32>
    %69 = vector.broadcast %68 : vector<1x128xf32> to vector<64x128xf32>
    %70 = arith.addf %67, %69 : vector<64x128xf32>
    %cst_42 = arith.constant 5.000000e-01 : f32
    %71 = vector.broadcast %cst_42 : f32 to vector<64x128xf32>
    %72 = arith.mulf %71, %70 : vector<64x128xf32>
    %cst_43 = arith.constant 5.000000e-01 : f32
    %73 = vector.broadcast %cst_43 : f32 to vector<64x128xf32>
    %74 = arith.mulf %73, %70 : vector<64x128xf32>
    %75 = math.tanh %74 : vector<64x128xf32>
    %cst_44 = arith.constant 1.000000e+00 : f32
    %76 = vector.broadcast %cst_44 : f32 to vector<64x128xf32>
    %77 = arith.addf %75, %76 : vector<64x128xf32>
    %78 = arith.mulf %72, %77 : vector<64x128xf32>
    %79 = arith.truncf %78 : vector<64x128xf32> to vector<64x128xbf16>
    %c0_45 = arith.constant 0 : index
    %c0_46 = arith.constant 0 : index
    %80 = vector.load %arg14[%c0_45, %c0_46] : memref<128x128xbf16, #tpu.memory_space<vmem>>, vector<128x128xbf16>
    %cst_47 = arith.constant dense<0.000000e+00> : vector<64x128xf32>
    %81 = tpu.matmul %79, %80, %cst_47 {dimension_numbers = #tpu.dot_dimension_numbers<[1], [0], [0], [1], [0, 0, 1, 1], [], []>} : vector<64x128xbf16>, vector<128x128xbf16>, vector<64x128xf32> -> vector<64x128xf32>
    %c0_48 = arith.constant 0 : index
    %c0_49 = arith.constant 0 : index
    %82 = vector.load %arg15[%c0_48, %c0_49] : memref<1x128xf32, #tpu.memory_space<vmem>>, vector<1x128xf32>
    %83 = vector.broadcast %82 : vector<1x128xf32> to vector<64x128xf32>
    %84 = arith.addf %81, %83 : vector<64x128xf32>
    %cst_50 = arith.constant 5.000000e-01 : f32
    %85 = vector.broadcast %cst_50 : f32 to vector<64x128xf32>
    %86 = arith.mulf %85, %84 : vector<64x128xf32>
    %cst_51 = arith.constant 5.000000e-01 : f32
    %87 = vector.broadcast %cst_51 : f32 to vector<64x128xf32>
    %88 = arith.mulf %87, %84 : vector<64x128xf32>
    %89 = math.tanh %88 : vector<64x128xf32>
    %cst_52 = arith.constant 1.000000e+00 : f32
    %90 = vector.broadcast %cst_52 : f32 to vector<64x128xf32>
    %91 = arith.addf %89, %90 : vector<64x128xf32>
    %92 = arith.mulf %86, %91 : vector<64x128xf32>
    %93 = arith.addf %64, %92 : vector<64x128xf32>
    %94 = arith.truncf %93 : vector<64x128xf32> to vector<64x128xbf16>
    %c0_53 = arith.constant 0 : index
    %c0_54 = arith.constant 0 : index
    %95 = vector.load %arg16[%c0_53, %c0_54] : memref<128x4xbf16, #tpu.memory_space<vmem>>, vector<128x4xbf16>
    %cst_55 = arith.constant dense<0.000000e+00> : vector<64x4xf32>
    %96 = tpu.matmul %94, %95, %cst_55 {dimension_numbers = #tpu.dot_dimension_numbers<[1], [0], [0], [1], [0, 0, 1, 1], [], []>} : vector<64x128xbf16>, vector<128x4xbf16>, vector<64x4xf32> -> vector<64x4xf32>
    %c0_56 = arith.constant 0 : index
    %c0_57 = arith.constant 0 : index
    %97 = vector.load %arg17[%c0_56, %c0_57] : memref<1x4xf32, #tpu.memory_space<vmem>>, vector<1x4xf32>
    %98 = vector.broadcast %97 : vector<1x4xf32> to vector<64x4xf32>
    %99 = arith.addf %96, %98 : vector<64x4xf32>
    %c0_58 = arith.constant 0 : index
    %c0_59 = arith.constant 0 : index
    %100 = vector.load %arg18[%c0_58, %c0_59] : memref<64x4xf32, #tpu.memory_space<vmem>>, vector<64x4xf32>
    tpu.vector_store %arg18[%c0_58, %c0_59], %99 {strides = array<i32>} : memref<64x4xf32, #tpu.memory_space<vmem>>, vector<64x4xf32>,
    return
  }
  func.func @transform_0(%arg0: i32) -> (i32, i32) {
    %c0_i32 = arith.constant 0 : i32
    %c0_i32_0 = arith.constant 0 : i32
    return %arg0, %c0_i32 : i32, i32
  }
  func.func @transform_1(%arg0: i32) -> (i32, i32) {
    %c0_i32 = arith.constant 0 : i32
    %c0_i32_0 = arith.constant 0 : i32
    %c0_i32_1 = arith.constant 0 : i32
    return %c0_i32, %c0_i32_0 : i32, i32
  }
  func.func @transform_2(%arg0: i32) -> (i32, i32) {
    %c0_i32 = arith.constant 0 : i32
    %c0_i32_0 = arith.constant 0 : i32
    %c0_i32_1 = arith.constant 0 : i32
    return %c0_i32, %c0_i32_0 : i32, i32
  }
  func.func @transform_3(%arg0: i32) -> (i32, i32) {
    %c0_i32 = arith.constant 0 : i32
    %c0_i32_0 = arith.constant 0 : i32
    %c0_i32_1 = arith.constant 0 : i32
    return %c0_i32, %c0_i32_0 : i32, i32
  }
  func.func @transform_4(%arg0: i32) -> (i32, i32) {
    %c0_i32 = arith.constant 0 : i32
    %c0_i32_0 = arith.constant 0 : i32
    %c0_i32_1 = arith.constant 0 : i32
    return %c0_i32, %c0_i32_0 : i32, i32
  }
  func.func @transform_5(%arg0: i32) -> (i32, i32) {
    %c0_i32 = arith.constant 0 : i32
    %c0_i32_0 = arith.constant 0 : i32
    %c0_i32_1 = arith.constant 0 : i32
    return %c0_i32, %c0_i32_0 : i32, i32
  }
  func.func @transform_6(%arg0: i32) -> (i32, i32) {
    %c0_i32 = arith.constant 0 : i32
    %c0_i32_0 = arith.constant 0 : i32
    %c0_i32_1 = arith.constant 0 : i32
    return %c0_i32, %c0_i32_0 : i32, i32
  }
  func.func @transform_7(%arg0: i32) -> (i32, i32) {
    %c0_i32 = arith.constant 0 : i32
    %c0_i32_0 = arith.constant 0 : i32
    %c0_i32_1 = arith.constant 0 : i32
    return %c0_i32, %c0_i32_0 : i32, i32
  }
  func.func @transform_8(%arg0: i32) -> (i32, i32) {
    %c0_i32 = arith.constant 0 : i32
    %c0_i32_0 = arith.constant 0 : i32
    %c0_i32_1 = arith.constant 0 : i32
    return %c0_i32, %c0_i32_0 : i32, i32
  }
  func.func @transform_9(%arg0: i32) -> (i32, i32) {
    %c0_i32 = arith.constant 0 : i32
    %c0_i32_0 = arith.constant 0 : i32
    %c0_i32_1 = arith.constant 0 : i32
    return %c0_i32, %c0_i32_0 : i32, i32
  }
  func.func @transform_10(%arg0: i32) -> (i32, i32) {
    %c0_i32 = arith.constant 0 : i32
    %c0_i32_0 = arith.constant 0 : i32
    %c0_i32_1 = arith.constant 0 : i32
    return %c0_i32, %c0_i32_0 : i32, i32
  }
  func.func @transform_11(%arg0: i32) -> (i32, i32) {
    %c0_i32 = arith.constant 0 : i32
    %c0_i32_0 = arith.constant 0 : i32
    %c0_i32_1 = arith.constant 0 : i32
    return %c0_i32, %c0_i32_0 : i32, i32
  }
  func.func @transform_12(%arg0: i32) -> (i32, i32) {
    %c0_i32 = arith.constant 0 : i32
    %c0_i32_0 = arith.constant 0 : i32
    %c0_i32_1 = arith.constant 0 : i32
    return %c0_i32, %c0_i32_0 : i32, i32
  }
  func.func @transform_13(%arg0: i32) -> (i32, i32) {
    %c0_i32 = arith.constant 0 : i32
    %c0_i32_0 = arith.constant 0 : i32
    %c0_i32_1 = arith.constant 0 : i32
    return %c0_i32, %c0_i32_0 : i32, i32
  }
  func.func @transform_14(%arg0: i32) -> (i32, i32) {
    %c0_i32 = arith.constant 0 : i32
    %c0_i32_0 = arith.constant 0 : i32
    %c0_i32_1 = arith.constant 0 : i32
    return %c0_i32, %c0_i32_0 : i32, i32
  }
  func.func @transform_15(%arg0: i32) -> (i32, i32) {
    %c0_i32 = arith.constant 0 : i32
    %c0_i32_0 = arith.constant 0 : i32
    %c0_i32_1 = arith.constant 0 : i32
    return %c0_i32, %c0_i32_0 : i32, i32
  }
  func.func @transform_16(%arg0: i32) -> (i32, i32) {
    %c0_i32 = arith.constant 0 : i32
    %c0_i32_0 = arith.constant 0 : i32
    %c0_i32_1 = arith.constant 0 : i32
    return %c0_i32, %c0_i32_0 : i32, i32
  }
  func.func @transform_17(%arg0: i32) -> (i32, i32) {
    %c0_i32 = arith.constant 0 : i32
    %c0_i32_0 = arith.constant 0 : i32
    return %arg0, %c0_i32 : i32, i32
  }
}

</mosaic_0001>

<bundles_post_ra>
// kernel: tpu_custom_call.1
= control target key start
LH: loop header
LB: loop body
LE: loop exit
PB: predicated region body
PF: predicated region fallthrough
CT: control target
= control target key end

     0   :  { %s2761_s0 = inlined_call_operand.vmem [shape: f32[128,40], index: 0, kind: input, shape index: {}]   ;;  %s2762_s1 = inlined_call_operand.hbm [shape: bf16[40,128], index: 1, kind: input, shape index: {}]   ;;  %s2763_s2 = inlined_call_operand.vmem [shape: f32[1,128], index: 2, kind: input, shape index: {}]   ;;  %s2764_s3 = inlined_call_operand.vmem [shape: bf16[128,128], index: 3, kind: input, shape index: {}]   ;;  %s2765_s4 = inlined_call_operand.vmem [shape: f32[1,128], index: 4, kind: input, shape index: {}]   ;;  %s2766_s5 = inlined_call_operand.vmem [shape: bf16[128,128], index: 5, kind: input, shape index: {}]   ;;  %s2767_s6 = inlined_call_operand.vmem [shape: f32[1,128], index: 6, kind: input, shape index: {}]   ;;  %s2768_s7 = inlined_call_operand.vmem [shape: bf16[128,128], index: 7, kind: input, shape index: {}]   ;;  %s2769_s8 = inlined_call_operand.vmem [shape: f32[1,128], index: 8, kind: input, shape index: {}]   ;;  %s2770_s9 = inlined_call_operand.hbm [shape: bf16[128,128], index: 9, kind: input, shape index: {}]   ;;  %s2771_s10 = inlined_call_operand.vmem [shape: f32[1,128], index: 10, kind: input, shape index: {}]   ;;  %s2772_s11 = inlined_call_operand.hbm [shape: bf16[128,128], index: 11, kind: input, shape index: {}]   ;;  %s2773_s12 = inlined_call_operand.vmem [shape: f32[1,128], index: 12, kind: input, shape index: {}]   ;;  %s2774_s13 = inlined_call_operand.hbm [shape: bf16[128,128], index: 13, kind: input, shape index: {}]   ;;  %s2775_s14 = inlined_call_operand.vmem [shape: f32[1,128], index: 14, kind: input, shape index: {}]   ;;  %s2776_s15 = inlined_call_operand.vmem [shape: bf16[128,4], index: 15, kind: input, shape index: {}]   ;;  %s2777_s16 = inlined_call_operand.vmem [shape: f32[1,4], index: 16, kind: input, shape index: {}]   ;;  %s2778_s17 = inlined_call_operand.vmem [shape: f32[128,4], index: 17, kind: output, shape index: {}]  }
   0x1   :  { %2780 = sst [smem:[#allocation12_spill]] %s2761_s0 }
   0x2   :  { %2781 = sst [smem:[#allocation13_spill]] %s2762_s1 }
   0x3   :  { %2782 = sst [smem:[#allocation14_spill]] %s2770_s9 }
   0x4   :  { %2783 = sst [smem:[#allocation15_spill]] %s2775_s14 }
   0x5   :  { %2784 = sst [smem:[#allocation16_spill]] %s2777_s16 }
   0x6   :  { %2785 = sst [smem:[#allocation17_spill]] %s2778_s17 }
   0x7   :  { %22 = vsyncpa [#allocation3], 0 }
   0x8   :  { %23 = vsyncpa [#allocation5], 0 }
   0x9   :  { %24 = vsyncpa [#allocation8], 0  ;;  %s2435_s24 = smov 0  }
   0xa LB: > { %s2779_s25 = sadd.s32 4294967295, %s2337_s24   ;;  %p1733_p0 = scmp.ge.s32.totalorder %s2337_s24, 1  ;;  %s2337_s24 = sphi %s2435_s24, %s30_s24  }
   0xb   : > { %p423_p1 = scmp.lt.s32.totalorder %s2337_s24, 3  ;;  %p2445_p2 = scmp.eq.s32.totalorder %s2779_s25, 0 }
   0xc   : > { %s2787_s9 = sld [smem:[#allocation14_spill]]  ;;  %s2339_s20 = smov [#allocation4]  }
   0xd   : > { %p2452_p3 = pnand %p1733_p0, %p423_p1  ;;  %s2789_s19 = sld [smem:[#allocation13_spill]] }
   0xe   : > { %s471_s21 = sshll.u32 %s2339_s20, 4  ;;  %s2340_s23 = smov [#allocation2]   ;;  %s472_s21 = int_to_ptr.vmem [resolvable:$true] %s471_s21 }
   0xf   : > { %p2060_p4 = pneg %p2452_p3  ;;  %s436_s27 = sshll.u32 %s2340_s23, 4  ;;  %s437_s27 = int_to_ptr.vmem [resolvable:$true] %s436_s27 }
  0x10   : > { %s486_s30 = sshll.u32 %s2772_s11, 4  ;;  %s2341_s18 = smov 64   ;;  %s487_s30 = int_to_ptr.hbm [resolvable:$true] %s486_s30 }
  0x11   : > { %p2463_p5 = pnand %p2445_p2, %p2060_p4  ;;  %s2343_s20 = smov [#allocation6]  }
  0x12   : > { %s469_s29 = sshll.u32 %s2787_s9, 4  ;;  %s488_s9 = sshll.u32 %s2343_s20, 4  ;;  %s470_s29 = int_to_ptr.hbm [resolvable:$true] %s469_s29  ;;  %s489_s9 = int_to_ptr.vmem [resolvable:$true] %s488_s9 }
  0x13   : > { %s434_s1 = sshll.u32 %s2789_s19, 4  ;;  %s2342_s19 = smov 4   ;;  %s435_s1 = int_to_ptr.hbm [resolvable:$true] %s434_s1 }
  0x14   : > { %2066 = dma.hbm_to_vmem [thread:$0]  (!%p2463_p5), %s470_s29, 1024, %s472_s21, [#allocation5], %s2341_s18, %s2341_s18, %s2342_s19  }
  0x15   : > { %2063 = dma.hbm_to_vmem [thread:$0]  (!%p2463_p5), %s435_s1, 320, %s437_s27, [#allocation3], %s2341_s18, %s2341_s18, %s2342_s19  }
  0x16   : > { %s503_s14 = sshll.u32 %s2774_s13, 4  ;;  %s2344_s25 = smov [#allocation7]   ;;  %s504_s14 = int_to_ptr.hbm [resolvable:$true] %s503_s14 }
  0x17   : > { %2069 = dma.hbm_to_vmem [thread:$0]  (!%p2463_p5), %s487_s30, 1024, %s489_s9, [#allocation5], %s2341_s18, %s2341_s18, %s2342_s19  }
  0x18   : > { %s505_s23 = sshll.u32 %s2344_s25, 4  ;;  %539 = sbr.rel (%p2452_p3) target bundleno = 1310 (0x51e), region = 88  ;;  %s506_s23 = int_to_ptr.vmem [resolvable:$true] %s505_s23 }
  0x19   : > { %2072 = dma.hbm_to_vmem [thread:$0]  (!%p2463_p5), %s504_s14, 1024, %s506_s23, [#allocation8], %s2341_s18, %s2341_s18, %s2342_s19  }
  0x1d   : > { %2324 = dma.done.wait (%p2445_p2), [#allocation3], 320  }
  0x1e   : > { %2326 = vsyncadd (%p2445_p2), [#allocation3], 4294966976 }
  0x1f   : > { %2328 = dma.done.wait (%p2445_p2), [#allocation5], 2048  }
  0x20   : > { %2330 = vsyncadd (%p2445_p2), [#allocation5], 4294965248 }
  0x21   : > { %2332 = dma.done.wait (%p2445_p2), [#allocation8], 1024  }
  0x22   : > { %2334 = vsyncadd (%p2445_p2), [#allocation8], 4294966272  ;;  %s2791_s9 = sadd.s32 4294967295, %s2337_s24   ;;  %v636_v0 = vld [vmem:[#allocation2 + $0x10] sm:$0xf]  ;;  %vm669_vm0 = vcmask 1043456  }
  0x23   : > { %s1744_s14 = sshll.u32 %s2791_s9, 3  ;;  %v650_v1 = vunpack.c.l.b16 %v636_v0  ;;  %v1987_v4 = vld [vmem:[#allocation2 + $0x8] sm:$0xff]  ;;  %s2792_s29 = sld [smem:[#allocation12_spill]]  ;;  %v1986_v5 = vld [vmem:[#allocation2] sm:$0xff]  ;;  %vm656_vm1 = vcmask 326656   ;;  %v1995_v12 = vld [vmem:[%s2764_s3 + $0x38] sm:$0xff] }
  0x24   : > { %p608_p6 = scmp.lt.s32.totalorder %s1744_s14, 15  ;;  %774 = vmatpush.bf16.msra.mxu1 %v1995_v12  ;;  %v1994_v13 = vld [vmem:[%s2764_s3 + $0x30] sm:$0xff]  ;;  %v1993_v14 = vld [vmem:[%s2764_s3 + $0x28] sm:$0xff]  ;;  %v1992_v17 = vld [vmem:[%s2764_s3 + $0x20] sm:$0xff]  ;;  %s2794_s21 = sld [smem:[#allocation16_spill]]  ;;  %vm1625_vm2 = vcmask 31744  }
  0x25   : > { %v653_v2 = vpack.c.b16 %v650_v1, %v650_v1  ;;  %v1991_v19 = vld [vmem:[%s2764_s3 + $0x18] sm:$0xff]  ;;  %v1990_v23 = vld [vmem:[%s2764_s3 + $0x10] sm:$0xff]  ;;  %v1989_v24 = vld [vmem:[%s2764_s3 + $0x8] sm:$0xff]  ;;  %s2795_s28 = sld [smem:[#allocation17_spill]] }
  0x26   : > { %s2797_s14 = smov (!%p608_p6, %s1744_s14), 15  ;;  %v1988_v25 = vld [vmem:[%s2764_s3] sm:$0xff]  ;;  %v2003_v37 = vld [vmem:[%s2766_s5 + $0x38] sm:$0xff]  ;;  %v2002_v38 = vld [vmem:[%s2766_s5 + $0x30] sm:$0xff] }
  0x27   : > { %s1745_s16 = sshll.u32 %s2797_s14, 3  ;;  %v671_v3 = vsel %vm669_vm0, %v653_v2, 0  ;;  %v2095_v27 = vld [vmem:[%s2763_s2] ss:$0 sm:$0xff]  ;;  %907 = vmatpush.bf16.msra.mxu2 %v2003_v37  ;;  %v2001_v49 = vld [vmem:[%s2766_s5 + $0x28] sm:$0xff]  ;;  %v1999_v51 = vld [vmem:[%s2766_s5 + $0x18] sm:$0xff] }
  0x28   : > { %678 = vmatpush.bf16.msra.mxu0 %v671_v3  ;;  %775 = vmatpush.bf16.msra.mxu1 %v1994_v13  ;;  %v2000_v50 = vld [vmem:[%s2766_s5 + $0x20] sm:$0xff]  ;;  %v1998_v52 = vld [vmem:[%s2766_s5 + $0x10] sm:$0xff]  ;;  %v1997_v53 = vld [vmem:[%s2766_s5 + $0x8] sm:$0xff] }
  0x29   : > { %s611_s0 = scalar_lea.vmem %s2792_s29, %s1745_s16  ;;  %v1996_v54 = vld [vmem:[%s2766_s5] sm:$0xff]  ;;  %s2793_s29 = sld [smem:[#allocation15_spill]] }
  0x2a   : > { %v620_v6 = vld [vmem:[%s611_s0] sm:$0xff]  ;;  %v621_v7 = vld [vmem:[%s611_s0 + $0x8] sm:$0xff]  ;;  %v622_v9 = vld [vmem:[%s611_s0 + $0x10] sm:$0xff] }
  0x2b   : > { %v628_v8 = vpack.c.bf16 %v621_v7, %v620_v6  ;;  %v623_v10 = vld [vmem:[%s611_s0 + $0x18] sm:$0xff]  ;;  %v624_v15 = vld [vmem:[%s611_s0 + $0x20] sm:$0xff]  ;;  %v625_v16 = vld [vmem:[%s611_s0 + $0x28] sm:$0xff]  ;;  %908 = vmatpush.bf16.msra.mxu2 %v2002_v38  ;;  %s617_s30 = scalar_lea.vmem %s2795_s28, %s1745_s16 }
  0x2c   : > { %679 = vmatpush.bf16.msra.mxu0 %v1987_v4  ;;  %v629_v11 = vpack.c.bf16 %v623_v10, %v622_v9  ;;  %776 = vmatpush.bf16.msra.mxu1 %v1993_v14  ;;  %v630_v18 = vpack.c.bf16 %v625_v16, %v624_v15  ;;  %v626_v20 = vld [vmem:[%s611_s0 + $0x30] sm:$0xff]  ;;  %v627_v21 = vld [vmem:[%s611_s0 + $0x38] sm:$0xff]  ;;  %v2096_v55 = vld [vmem:[%s2765_s4] ss:$0 sm:$0xff] }
  0x2d   : > { %v631_v22 = vpack.c.bf16 %v627_v21, %v626_v20 }
  0x2f   : > { %909 = vmatpush.bf16.msra.mxu2 %v2001_v49 }
  0x30   : > { %680 = vmatpush.bf16.msra.mxu0 %v1986_v5  ;;  %777 = vmatpush.bf16.msra.mxu1 %v1992_v17 }
  0x33   : > { %1756 = vmatmul.msk.bf16.vlgmr.msra.gmra.mxu0 %vm656_vm1, %v628_v8  ;;  %910 = vmatpush.bf16.msra.mxu2 %v2000_v50 }
  0x34   : > { %778 = vmatpush.bf16.msra.mxu1 %v1991_v19 }
  0x37   : > { %911 = vmatpush.bf16.msra.mxu2 %v1999_v51 }
  0x38   : > { %779 = vmatpush.bf16.msra.mxu1 %v1990_v23  ;;  %v2011_v23 = vld [vmem:[%s2768_s7 + $0x38] sm:$0xff] }
  0x39   : > { %1048 = vmatpush.bf16.msra.mxu3 %v2011_v23 }
  0x3b   : > { %912 = vmatpush.bf16.msra.mxu2 %v1998_v52 }
  0x3c   : > { %780 = vmatpush.bf16.msra.mxu1 %v1989_v24 }
  0x3f   : > { %913 = vmatpush.bf16.msra.mxu2 %v1997_v53  ;;  %v2010_v53 = vld [vmem:[%s2768_s7 + $0x30] sm:$0xff] }
  0x40   : > { %781 = vmatpush.bf16.msra.mxu1 %v1988_v25  ;;  %1049 = vmatpush.bf16.msra.mxu3 %v2010_v53 }
  0x43   : > { %1757 = vmatmul.msk.bf16.gmra.mxu0 %vm656_vm1, %v629_v11  ;;  %914 = vmatpush.bf16.msra.mxu2 %v1996_v54  ;;  %v2009_v54 = vld [vmem:[%s2768_s7 + $0x28] sm:$0xff] }
  0x44   : > { %1050 = vmatpush.bf16.msra.mxu3 %v2009_v54 }
  0x53   : > { %1758 = vmatmul.msk.bf16.gmra.mxu0 %vm656_vm1, %v630_v18 }
  0x63   : > { %1759 = vmatmul.msk.bf16.gmra.mxu0 %vm656_vm1, %v631_v22 }
  0xb0   : > { %v682_v26 = vpop.f32.mrf.mxu0 }
  0xb1   : > { %v2536_v29 = vadd.f32 %v2095_v27, %v682_v26 }
  0xb8   : > { %v684_v28 = vpop.f32.mrf.mxu0 }
  0xb9   : > { %v2538_v30 = vadd.f32 %v2095_v27, %v684_v28 }
  0xbb   : > { %v702_v31 = vpack.c.bf16 %v2538_v30, %v2536_v29 }
  0xbd   : > { %782 = vmatmul.bf16.vlgmr.msra.gmra.mxu1 %v702_v31 }
  0xc0   : > { %v687_v32 = vpop.f32.mrf.mxu0 }
  0xc1   : > { %v2542_v34 = vadd.f32 %v2095_v27, %v687_v32 }
  0xc8   : > { %v689_v33 = vpop.f32.mrf.mxu0 }
  0xc9   : > { %v2544_v35 = vadd.f32 %v2095_v27, %v689_v33 }
  0xcb   : > { %v703_v36 = vpack.c.bf16 %v2544_v35, %v2542_v34 }
  0xcd   : > { %787 = vmatmul.bf16.gmra.mxu1 %v703_v36 }
  0xd0   : > { %v692_v39 = vpop.f32.mrf.mxu0 }
  0xd1   : > { %v2554_v41 = vadd.f32 %v2095_v27, %v692_v39 }
  0xd8   : > { %v694_v40 = vpop.f32.mrf.mxu0 }
  0xd9   : > { %v2556_v42 = vadd.f32 %v2095_v27, %v694_v40 }
  0xdb   : > { %v704_v43 = vpack.c.bf16 %v2556_v42, %v2554_v41 }
  0xdd   : > { %792 = vmatmul.bf16.gmra.mxu1 %v704_v43 }
  0xe0   : > { %v697_v44 = vpop.f32.mrf.mxu0 }
  0xe1   : > { %v2560_v46 = vadd.f32 %v2095_v27, %v697_v44 }
  0xe8   : > { %v699_v45 = vpop.f32.mrf.mxu0 }
  0xe9   : > { %v2562_v47 = vadd.f32 %v2095_v27, %v699_v45 }
  0xeb   : > { %v705_v48 = vpack.c.bf16 %v2562_v47, %v2560_v46 }
  0xed   : > { %797 = vmatmul.bf16.gmra.mxu1 %v705_v48 }
 0x13a   : > { %v783_v56 = vpop.f32.mrf.mxu1 }
 0x13b   : > { %v784_v57 = vadd.f32 %v2096_v55, %v783_v56  ;;  %v2007_v56 = vld [vmem:[%s2768_s7 + $0x18] sm:$0xff] }
 0x13d   : > { %v803_v58 = vmul.f32 0.5, %v784_v57  ;;  %v2006_v57 = vld [vmem:[%s2768_s7 + $0x10] sm:$0xff] }
 0x13f   : > { %2103 = vtanh.f32 %v803_v58 }
 0x142   : > { %v785_v59 = vpop.f32.mrf.mxu1 }
 0x143   : > { %v786_v60 = vadd.f32 %v2096_v55, %v785_v59  ;;  %v2004_v59 = vld [vmem:[%s2768_s7] sm:$0xff] }
 0x145   : > { %v804_v61 = vmul.f32 0.5, %v786_v60  ;;  %v2104_v62 = vpop.eup %2103  ;;  %v2614_v60 = vld [vmem:[%s2767_s6] ss:$0 sm:$0xff] }
 0x146   : > { %v819_v1 = vadd.f32 1.0, %v2104_v62 }
 0x147   : > { %2105 = vtanh.f32 %v804_v61 }
 0x148   : > { %v827_v5 = vmul.f32 %v819_v1, %v803_v58  ;;  %v2005_v58 = vld [vmem:[%s2768_s7 + $0x8] sm:$0xff] }
 0x14a   : > { %v788_v63 = vpop.f32.mrf.mxu1 }
 0x14b   : > { %v789_v0 = vadd.f32 %v2096_v55, %v788_v63 }
 0x14d   : > { %v2106_v2 = vpop.eup %2105  ;;  %v805_v4 = vmul.f32 0.5, %v789_v0 }
 0x14e   : > { %v820_v3 = vadd.f32 1.0, %v2106_v2 }
 0x14f   : > { %2107 = vtanh.f32 %v805_v4 }
 0x150   : > { %v828_v6 = vmul.f32 %v820_v3, %v804_v61 }
 0x152   : > { %v790_v7 = vpop.f32.mrf.mxu1  ;;  %v835_v8 = vpack.c.bf16 %v828_v6, %v827_v5 }
 0x153   : > { %v791_v9 = vadd.f32 %v2096_v55, %v790_v7 }
 0x154   : > { %915 = vmatmul.bf16.vlgmr.msra.gmra.mxu2 %v835_v8 }
 0x155   : > { %v806_v10 = vmul.f32 0.5, %v791_v9  ;;  %v2108_v11 = vpop.eup %2107 }
 0x156   : > { %v821_v14 = vadd.f32 1.0, %v2108_v11 }
 0x157   : > { %2109 = vtanh.f32 %v806_v10 }
 0x158   : > { %v829_v18 = vmul.f32 %v821_v14, %v805_v4 }
 0x15a   : > { %v793_v12 = vpop.f32.mrf.mxu1 }
 0x15b   : > { %v794_v13 = vadd.f32 %v2096_v55, %v793_v12 }
 0x15d   : > { %v2110_v15 = vpop.eup %2109  ;;  %v807_v17 = vmul.f32 0.5, %v794_v13 }
 0x15e   : > { %v822_v16 = vadd.f32 1.0, %v2110_v15 }
 0x15f   : > { %2111 = vtanh.f32 %v807_v17 }
 0x160   : > { %v830_v19 = vmul.f32 %v822_v16, %v806_v10 }
 0x162   : > { %v795_v20 = vpop.f32.mrf.mxu1  ;;  %v836_v21 = vpack.c.bf16 %v830_v19, %v829_v18 }
 0x163   : > { %v796_v22 = vadd.f32 %v2096_v55, %v795_v20 }
 0x164   : > { %920 = vmatmul.bf16.gmra.mxu2 %v836_v21 }
 0x165   : > { %v808_v24 = vmul.f32 0.5, %v796_v22  ;;  %v2112_v25 = vpop.eup %2111 }
 0x166   : > { %v823_v28 = vadd.f32 1.0, %v2112_v25 }
 0x167   : > { %2113 = vtanh.f32 %v808_v24 }
 0x168   : > { %v831_v36 = vmul.f32 %v823_v28, %v807_v17 }
 0x16a   : > { %v798_v26 = vpop.f32.mrf.mxu1 }
 0x16b   : > { %v799_v27 = vadd.f32 %v2096_v55, %v798_v26 }
 0x16d   : > { %v2114_v31 = vpop.eup %2113  ;;  %v809_v33 = vmul.f32 0.5, %v799_v27 }
 0x16e   : > { %v824_v32 = vadd.f32 1.0, %v2114_v31 }
 0x16f   : > { %2115 = vtanh.f32 %v809_v33 }
 0x170   : > { %v832_v37 = vmul.f32 %v824_v32, %v808_v24 }
 0x172   : > { %v800_v38 = vpop.f32.mrf.mxu1  ;;  %v837_v39 = vpack.c.bf16 %v832_v37, %v831_v36  ;;  %v2018_v37 = vld [vmem:[#allocation4 + $0x30] sm:$0xff] }
 0x173   : > { %v801_v40 = vadd.f32 %v2096_v55, %v800_v38  ;;  %v2008_v55 = vld [vmem:[%s2768_s7 + $0x20] sm:$0xff] }
 0x174   : > { %925 = vmatmul.bf16.gmra.mxu2 %v837_v39  ;;  %1051 = vmatpush.bf16.msra.mxu3 %v2008_v55  ;;  %v2015_v55 = vld [vmem:[#allocation4 + $0x18] sm:$0xff] }
 0x175   : > { %v810_v43 = vmul.f32 0.5, %v801_v40  ;;  %v2116_v44 = vpop.eup %2115  ;;  %v2017_v40 = vld [vmem:[#allocation4 + $0x28] sm:$0xff] }
 0x176   : > { %v825_v45 = vadd.f32 1.0, %v2116_v44 }
 0x177   : > { %2117 = vtanh.f32 %v810_v43 }
 0x178   : > { %v833_v50 = vmul.f32 %v825_v45, %v809_v33  ;;  %1052 = vmatpush.bf16.msra.mxu3 %v2007_v56  ;;  %v2019_v33 = vld [vmem:[#allocation4 + $0x38] sm:$0xff] }
 0x179   : > { %1181 = vmatpush.bf16.msrb.mxu0 %v2019_v33 }
 0x17c   : > { %1053 = vmatpush.bf16.msra.mxu3 %v2006_v57 }
 0x17d   : > { %v2118_v48 = vpop.eup %2117  ;;  %1182 = vmatpush.bf16.msrb.mxu0 %v2018_v37 }
 0x17e   : > { %v826_v49 = vadd.f32 1.0, %v2118_v48 }
 0x180   : > { %v834_v51 = vmul.f32 %v826_v49, %v810_v43  ;;  %1054 = vmatpush.bf16.msra.mxu3 %v2005_v58  ;;  %v2016_v49 = vld [vmem:[#allocation4 + $0x20] sm:$0xff] }
 0x181   : > { %1183 = vmatpush.bf16.msrb.mxu0 %v2017_v40  ;;  %v2026_v40 = vld [vmem:[#allocation6 + $0x30] sm:$0xff] }
 0x182   : > { %v838_v52 = vpack.c.bf16 %v834_v51, %v833_v50 }
 0x184   : > { %930 = vmatmul.bf16.gmra.mxu2 %v838_v52  ;;  %1055 = vmatpush.bf16.msra.mxu3 %v2004_v59 }
 0x185   : > { %1184 = vmatpush.bf16.msrb.mxu0 %v2016_v49 }
 0x189   : > { %1185 = vmatpush.bf16.msrb.mxu0 %v2015_v55 }
 0x1d7   : > { %v916_v61 = vpop.f32.mrf.mxu2 }
 0x1d8   : > { %v917_v62 = vadd.f32 %v2614_v60, %v916_v61 }
 0x1da   : > { %v936_v63 = vmul.f32 0.5, %v917_v62 }
 0x1dc   : > { %2119 = vtanh.f32 %v936_v63 }
 0x1df   : > { %v918_v0 = vpop.f32.mrf.mxu2 }
 0x1e0   : > { %v919_v1 = vadd.f32 %v2614_v60, %v918_v0  ;;  %v2014_v0 = vld [vmem:[#allocation4 + $0x10] sm:$0xff] }
 0x1e1   : > { %1186 = vmatpush.bf16.msrb.mxu0 %v2014_v0 }
 0x1e2   : > { %v937_v2 = vmul.f32 0.5, %v919_v1  ;;  %v2120_v3 = vpop.eup %2119  ;;  %v2013_v1 = vld [vmem:[#allocation4 + $0x8] sm:$0xff] }
 0x1e3   : > { %v952_v4 = vadd.f32 1.0, %v2120_v3  ;;  %v2098_v3 = vld [vmem:[%s2769_s8] ss:$0 sm:$0xff] }
 0x1e4   : > { %2121 = vtanh.f32 %v937_v2 }
 0x1e5   : > { %v960_v9 = vmul.f32 %v952_v4, %v936_v63  ;;  %1187 = vmatpush.bf16.msrb.mxu0 %v2013_v1 }
 0x1e7   : > { %v921_v5 = vpop.f32.mrf.mxu2  ;;  %v2620_v13 = vadd.f32 %v960_v9, %v2536_v29 }
 0x1e8   : > { %v922_v6 = vadd.f32 %v2614_v60, %v921_v5 }
 0x1ea   : > { %v2122_v7 = vpop.eup %2121  ;;  %v938_v8 = vmul.f32 0.5, %v922_v6 }
 0x1eb   : > { %v953_v10 = vadd.f32 1.0, %v2122_v7 }
 0x1ec   : > { %2123 = vtanh.f32 %v938_v8 }
 0x1ed   : > { %v961_v11 = vmul.f32 %v953_v10, %v937_v2  ;;  %v2012_v2 = vld [vmem:[#allocation4] sm:$0xff] }
 0x1ee   : > { %1188 = vmatpush.bf16.msrb.mxu0 %v2012_v2 }
 0x1ef   : > { %v923_v12 = vpop.f32.mrf.mxu2  ;;  %v2623_v14 = vadd.f32 %v961_v11, %v2538_v30 }
 0x1f0   : > { %v924_v15 = vadd.f32 %v2614_v60, %v923_v12 }
 0x1f1   : > { %v976_v16 = vpack.c.bf16 %v2623_v14, %v2620_v13 }
 0x1f2   : > { %v939_v17 = vmul.f32 0.5, %v924_v15  ;;  %v2124_v18 = vpop.eup %2123 }
 0x1f3   : > { %1056 = vmatmul.bf16.vlgmr.msra.gmra.mxu3 %v976_v16  ;;  %v954_v19 = vadd.f32 1.0, %v2124_v18 }
 0x1f4   : > { %2125 = vtanh.f32 %v939_v17 }
 0x1f5   : > { %v962_v29 = vmul.f32 %v954_v19, %v938_v8 }
 0x1f7   : > { %v926_v20 = vpop.f32.mrf.mxu2  ;;  %v2630_v26 = vadd.f32 %v962_v29, %v2542_v34 }
 0x1f8   : > { %v927_v21 = vadd.f32 %v2614_v60, %v926_v20 }
 0x1fa   : > { %v2126_v22 = vpop.eup %2125  ;;  %v940_v23 = vmul.f32 0.5, %v927_v21 }
 0x1fb   : > { %v955_v24 = vadd.f32 1.0, %v2126_v22 }
 0x1fc   : > { %2127 = vtanh.f32 %v940_v23 }
 0x1fd   : > { %v963_v25 = vmul.f32 %v955_v24, %v939_v17 }
 0x1ff   : > { %v928_v30 = vpop.f32.mrf.mxu2  ;;  %v2633_v27 = vadd.f32 %v963_v25, %v2544_v35 }
 0x200   : > { %v929_v28 = vadd.f32 %v2614_v60, %v928_v30 }
 0x201   : > { %v977_v31 = vpack.c.bf16 %v2633_v27, %v2630_v26 }
 0x202   : > { %v941_v32 = vmul.f32 0.5, %v929_v28  ;;  %v2128_v36 = vpop.eup %2127 }
 0x203   : > { %1061 = vmatmul.bf16.gmra.mxu3 %v977_v31  ;;  %v956_v38 = vadd.f32 1.0, %v2128_v36 }
 0x204   : > { %2129 = vtanh.f32 %v941_v32 }
 0x205   : > { %v964_v44 = vmul.f32 %v956_v38, %v940_v23 }
 0x207   : > { %v931_v39 = vpop.f32.mrf.mxu2  ;;  %v2640_v51 = vadd.f32 %v964_v44, %v2554_v41  ;;  %v2025_v44 = vld [vmem:[#allocation6 + $0x28] sm:$0xff] }
 0x208   : > { %v932_v34 = vadd.f32 %v2614_v60, %v931_v39  ;;  %v2027_v39 = vld [vmem:[#allocation6 + $0x38] sm:$0xff] }
 0x209   : > { %1322 = vmatpush.bf16.msrb.mxu1 %v2027_v39 }
 0x20a   : > { %v2130_v35 = vpop.eup %2129  ;;  %v942_v43 = vmul.f32 0.5, %v932_v34 }
 0x20b   : > { %v957_v45 = vadd.f32 1.0, %v2130_v35 }
 0x20c   : > { %2131 = vtanh.f32 %v942_v43 }
 0x20d   : > { %v965_v48 = vmul.f32 %v957_v45, %v941_v32  ;;  %1323 = vmatpush.bf16.msrb.mxu1 %v2026_v40 }
 0x20f   : > { %v933_v50 = vpop.f32.mrf.mxu2  ;;  %v2643_v52 = vadd.f32 %v965_v48, %v2556_v42 }
 0x210   : > { %v934_v53 = vadd.f32 %v2614_v60, %v933_v50 }
 0x211   : > { %v978_v54 = vpack.c.bf16 %v2643_v52, %v2640_v51  ;;  %1324 = vmatpush.bf16.msrb.mxu1 %v2025_v44 }
 0x212   : > { %v943_v56 = vmul.f32 0.5, %v934_v53  ;;  %v2132_v57 = vpop.eup %2131  ;;  %v2024_v53 = vld [vmem:[#allocation6 + $0x20] sm:$0xff] }
 0x213   : > { %1066 = vmatmul.bf16.gmra.mxu3 %v978_v54  ;;  %v958_v58 = vadd.f32 1.0, %v2132_v57 }
 0x214   : > { %2133 = vtanh.f32 %v943_v56 }
 0x215   : > { %v966_v61 = vmul.f32 %v958_v58, %v942_v43  ;;  %1325 = vmatpush.bf16.msrb.mxu1 %v2024_v53  ;;  %v2034_v53 = vld [vmem:[#allocation7 + $0x30] sm:$0xff] }
 0x217   : > { %v2649_v42 = vadd.f32 %v966_v61, %v2560_v46 }
 0x21a   : > { %v2134_v59 = vpop.eup %2133 }
 0x21b   : > { %v959_v41 = vadd.f32 1.0, %v2134_v59  ;;  %v2023_v59 = vld [vmem:[#allocation6 + $0x18] sm:$0xff] }
 0x21c   : > { %1326 = vmatpush.bf16.msrb.mxu1 %v2023_v59 }
 0x21d   : > { %v967_v62 = vmul.f32 %v959_v41, %v943_v56 }
 0x21f   : > { %v2652_v60 = vadd.f32 %v967_v62, %v2562_v47 }
 0x221   : > { %v979_v63 = vpack.c.bf16 %v2652_v60, %v2649_v42 }
 0x223   : > { %1071 = vmatmul.bf16.gmra.mxu3 %v979_v63 }
 0x276   : > { %v1057_v4 = vpop.f32.mrf.mxu3 }
 0x277   : > { %v1058_v46 = vadd.f32 %v2098_v3, %v1057_v4 }
 0x279   : > { %v1077_v5 = vmul.f32 0.5, %v1058_v46 }
 0x27b   : > { %2135 = vtanh.f32 %v1077_v5 }
 0x27e   : > { %v1059_v6 = vpop.f32.mrf.mxu3 }
 0x27f   : > { %v1060_v47 = vadd.f32 %v2098_v3, %v1059_v6  ;;  %v2021_v6 = vld [vmem:[#allocation6 + $0x8] sm:$0xff] }
 0x281   : > { %v1078_v7 = vmul.f32 0.5, %v1060_v47  ;;  %v2136_v8 = vpop.eup %2135  ;;  %v2020_v47 = vld [vmem:[#allocation6] sm:$0xff] }
 0x282   : > { %v1093_v11 = vadd.f32 1.0, %v2136_v8 }
 0x283   : > { %2137 = vtanh.f32 %v1078_v7 }
 0x284   : > { %v1101_v17 = vmul.f32 %v1093_v11, %v1077_v5  ;;  %v2022_v5 = vld [vmem:[#allocation6 + $0x10] sm:$0xff] }
 0x285   : > { %1327 = vmatpush.bf16.msrb.mxu1 %v2022_v5 }
 0x286   : > { %v1062_v9 = vpop.f32.mrf.mxu3 }
 0x287   : > { %v1063_v10 = vadd.f32 %v2098_v3, %v1062_v9 }
 0x289   : > { %v2138_v12 = vpop.eup %2137  ;;  %v1079_v16 = vmul.f32 0.5, %v1063_v10  ;;  %1328 = vmatpush.bf16.msrb.mxu1 %v2021_v6 }
 0x28a   : > { %v1094_v15 = vadd.f32 1.0, %v2138_v12 }
 0x28b   : > { %2139 = vtanh.f32 %v1079_v16 }
 0x28c   : > { %v1102_v18 = vmul.f32 %v1094_v15, %v1078_v7 }
 0x28d   : > { %1329 = vmatpush.bf16.msrb.mxu1 %v2020_v47 }
 0x28e   : > { %v1064_v19 = vpop.f32.mrf.mxu3  ;;  %v1109_v20 = vpack.c.bf16 %v1102_v18, %v1101_v17 }
 0x28f   : > { %v1065_v21 = vadd.f32 %v2098_v3, %v1064_v19 }
 0x290   : > { %1189 = vmatmul.bf16.vlgmr.msrb.gmra.mxu0 %v1109_v20 }
 0x291   : > { %v1080_v22 = vmul.f32 0.5, %v1065_v21  ;;  %v2140_v23 = vpop.eup %2139 }
 0x292   : > { %v1095_v25 = vadd.f32 1.0, %v2140_v23 }
 0x293   : > { %2141 = vtanh.f32 %v1080_v22 }
 0x294   : > { %v1103_v32 = vmul.f32 %v1095_v25, %v1079_v16 }
 0x296   : > { %v1067_v29 = vpop.f32.mrf.mxu3 }
 0x297   : > { %v1068_v24 = vadd.f32 %v2098_v3, %v1067_v29 }
 0x299   : > { %v2142_v30 = vpop.eup %2141  ;;  %v1081_v31 = vmul.f32 0.5, %v1068_v24 }
 0x29a   : > { %v1096_v28 = vadd.f32 1.0, %v2142_v30 }
 0x29b   : > { %2143 = vtanh.f32 %v1081_v31 }
 0x29c   : > { %v1104_v33 = vmul.f32 %v1096_v28, %v1080_v22 }
 0x29e   : > { %v1069_v36 = vpop.f32.mrf.mxu3  ;;  %v1110_v37 = vpack.c.bf16 %v1104_v33, %v1103_v32 }
 0x29f   : > { %v1070_v38 = vadd.f32 %v2098_v3, %v1069_v36 }
 0x2a0   : > { %1194 = vmatmul.bf16.gmra.mxu0 %v1110_v37 }
 0x2a1   : > { %v1082_v34 = vmul.f32 0.5, %v1070_v38  ;;  %v2144_v35 = vpop.eup %2143 }
 0x2a2   : > { %v1097_v48 = vadd.f32 1.0, %v2144_v35 }
 0x2a3   : > { %2145 = vtanh.f32 %v1082_v34 }
 0x2a4   : > { %v1105_v55 = vmul.f32 %v1097_v48, %v1081_v31 }
 0x2a6   : > { %v1072_v43 = vpop.f32.mrf.mxu3 }
 0x2a7   : > { %v1073_v45 = vadd.f32 %v2098_v3, %v1072_v43 }
 0x2a9   : > { %v2146_v49 = vpop.eup %2145  ;;  %v1083_v54 = vmul.f32 0.5, %v1073_v45 }
 0x2aa   : > { %v1098_v50 = vadd.f32 1.0, %v2146_v49  ;;  %v2035_v49 = vld [vmem:[#allocation7 + $0x38] sm:$0xff] }
 0x2ab   : > { %2147 = vtanh.f32 %v1083_v54  ;;  %1455 = vmatpush.bf16.msrb.mxu2 %v2035_v49 }
 0x2ac   : > { %v1106_v56 = vmul.f32 %v1098_v50, %v1082_v34 }
 0x2ae   : > { %v1074_v57 = vpop.f32.mrf.mxu3  ;;  %v1111_v58 = vpack.c.bf16 %v1106_v56, %v1105_v55  ;;  %v2033_v56 = vld [vmem:[#allocation7 + $0x28] sm:$0xff] }
 0x2af   : > { %v1075_v61 = vadd.f32 %v2098_v3, %v1074_v57  ;;  %v2662_v3 = vld [vmem:[%s2771_s10] ss:$0 sm:$0xff]  ;;  %1456 = vmatpush.bf16.msrb.mxu2 %v2034_v53 }
 0x2b0   : > { %1199 = vmatmul.bf16.gmra.mxu0 %v1111_v58 }
 0x2b1   : > { %v1084_v41 = vmul.f32 0.5, %v1075_v61  ;;  %v2148_v62 = vpop.eup %2147 }
 0x2b2   : > { %v1099_v63 = vadd.f32 1.0, %v2148_v62 }
 0x2b3   : > { %2149 = vtanh.f32 %v1084_v41  ;;  %1457 = vmatpush.bf16.msrb.mxu2 %v2033_v56  ;;  %v2042_v56 = vld [vmem:[%s2776_s15 + $0x30] sm:$0xff] }
 0x2b4   : > { %v1107_v2 = vmul.f32 %v1099_v63, %v1083_v54 }
 0x2b9   : > { %v2150_v0 = vpop.eup %2149 }
 0x2ba   : > { %v1100_v1 = vadd.f32 1.0, %v2150_v0 }
 0x2bc   : > { %v1108_v4 = vmul.f32 %v1100_v1, %v1084_v41  ;;  %v2032_v41 = vld [vmem:[#allocation7 + $0x20] sm:$0xff] }
 0x2bd   : > { %1458 = vmatpush.bf16.msrb.mxu2 %v2032_v41 }
 0x2be   : > { %v1112_v46 = vpack.c.bf16 %v1108_v4, %v1107_v2  ;;  %v2031_v4 = vld [vmem:[#allocation7 + $0x18] sm:$0xff] }
 0x2c0   : > { %1204 = vmatmul.bf16.gmra.mxu0 %v1112_v46 }
 0x2c1   : > { %1459 = vmatpush.bf16.msrb.mxu2 %v2031_v4 }
 0x30d   : > { %v1190_v7 = vpop.f32.mrf.mxu0 }
 0x30e   : > { %v1191_v8 = vadd.f32 %v2662_v3, %v1190_v7 }
 0x310   : > { %v1210_v9 = vmul.f32 0.5, %v1191_v8 }
 0x312   : > { %2151 = vtanh.f32 %v1210_v9 }
 0x315   : > { %v1192_v10 = vpop.f32.mrf.mxu0 }
 0x316   : > { %v1193_v11 = vadd.f32 %v2662_v3, %v1192_v10  ;;  %v2030_v10 = vld [vmem:[#allocation7 + $0x10] sm:$0xff] }
 0x317   : > { %1460 = vmatpush.bf16.msrb.mxu2 %v2030_v10 }
 0x318   : > { %v1211_v12 = vmul.f32 0.5, %v1193_v11  ;;  %v2152_v15 = vpop.eup %2151  ;;  %v2029_v11 = vld [vmem:[#allocation7 + $0x8] sm:$0xff] }
 0x319   : > { %v1226_v16 = vadd.f32 1.0, %v2152_v15  ;;  %v2100_v15 = vld [vmem:[%s2773_s12] ss:$0 sm:$0xff] }
 0x31a   : > { %2153 = vtanh.f32 %v1211_v12 }
 0x31b   : > { %v1234_v21 = vmul.f32 %v1226_v16, %v1210_v9  ;;  %1461 = vmatpush.bf16.msrb.mxu2 %v2029_v11 }
 0x31d   : > { %v1195_v17 = vpop.f32.mrf.mxu0  ;;  %v2668_v29 = vadd.f32 %v1234_v21, %v2620_v13 }
 0x31e   : > { %v1196_v18 = vadd.f32 %v2662_v3, %v1195_v17 }
 0x320   : > { %v2154_v19 = vpop.eup %2153  ;;  %v1212_v20 = vmul.f32 0.5, %v1196_v18 }
 0x321   : > { %v1227_v22 = vadd.f32 1.0, %v2154_v19 }
 0x322   : > { %2155 = vtanh.f32 %v1212_v20 }
 0x323   : > { %v1235_v23 = vmul.f32 %v1227_v22, %v1211_v12  ;;  %v2028_v12 = vld [vmem:[#allocation7] sm:$0xff] }
 0x324   : > { %1462 = vmatpush.bf16.msrb.mxu2 %v2028_v12 }
 0x325   : > { %v2671_v24 = vadd.f32 %v1235_v23, %v2623_v14  ;;  %v1197_v25 = vpop.f32.mrf.mxu0 }
 0x326   : > { %v1198_v30 = vadd.f32 %v2662_v3, %v1197_v25 }
 0x327   : > { %v1250_v28 = vpack.c.bf16 %v2671_v24, %v2668_v29 }
 0x328   : > { %v1213_v31 = vmul.f32 0.5, %v1198_v30  ;;  %v2156_v32 = vpop.eup %2155 }
 0x329   : > { %1330 = vmatmul.bf16.vlgmr.msrb.gmra.mxu1 %v1250_v28  ;;  %v1228_v33 = vadd.f32 1.0, %v2156_v32 }
 0x32a   : > { %2157 = vtanh.f32 %v1213_v31 }
 0x32b   : > { %v1236_v39 = vmul.f32 %v1228_v33, %v1212_v20 }
 0x32d   : > { %v1200_v36 = vpop.f32.mrf.mxu0  ;;  %v2678_v35 = vadd.f32 %v1236_v39, %v2630_v26 }
 0x32e   : > { %v1201_v37 = vadd.f32 %v2662_v3, %v1200_v36 }
 0x330   : > { %v2158_v38 = vpop.eup %2157  ;;  %v1214_v13 = vmul.f32 0.5, %v1201_v37 }
 0x331   : > { %v1229_v34 = vadd.f32 1.0, %v2158_v38 }
 0x332   : > { %2159 = vtanh.f32 %v1214_v13 }
 0x333   : > { %v1237_v14 = vmul.f32 %v1229_v34, %v1213_v31 }
 0x335   : > { %v1202_v40 = vpop.f32.mrf.mxu0  ;;  %v2681_v43 = vadd.f32 %v1237_v14, %v2633_v27 }
 0x336   : > { %v1203_v44 = vadd.f32 %v2662_v3, %v1202_v40 }
 0x337   : > { %v1251_v45 = vpack.c.bf16 %v2681_v43, %v2678_v35 }
 0x338   : > { %v1215_v48 = vmul.f32 0.5, %v1203_v44  ;;  %v2160_v50 = vpop.eup %2159 }
 0x339   : > { %1335 = vmatmul.bf16.gmra.mxu1 %v1251_v45  ;;  %v1230_v54 = vadd.f32 1.0, %v2160_v50 }
 0x33a   : > { %2161 = vtanh.f32 %v1215_v48 }
 0x33b   : > { %v1238_v58 = vmul.f32 %v1230_v54, %v1214_v13 }
 0x33d   : > { %v1205_v55 = vpop.f32.mrf.mxu0  ;;  %v2688_v63 = vadd.f32 %v1238_v58, %v2640_v51  ;;  %v2041_v58 = vld [vmem:[%s2776_s15 + $0x28] sm:$0xff] }
 0x33e   : > { %v1206_v26 = vadd.f32 %v2662_v3, %v1205_v55  ;;  %v2043_v55 = vld [vmem:[%s2776_s15 + $0x38] sm:$0xff] }
 0x33f   : > { %1596 = vmatpush.bf16.msrb.mxu3 %v2043_v55 }
 0x340   : > { %v2162_v27 = vpop.eup %2161  ;;  %v1216_v57 = vmul.f32 0.5, %v1206_v26 }
 0x341   : > { %v1231_v59 = vadd.f32 1.0, %v2162_v27 }
 0x342   : > { %2163 = vtanh.f32 %v1216_v57 }
 0x343   : > { %v1239_v61 = vmul.f32 %v1231_v59, %v1215_v48  ;;  %1597 = vmatpush.bf16.msrb.mxu3 %v2042_v56 }
 0x345   : > { %v1207_v62 = vpop.f32.mrf.mxu0  ;;  %v2691_v0 = vadd.f32 %v1239_v61, %v2643_v52 }
 0x346   : > { %v1208_v1 = vadd.f32 %v2662_v3, %v1207_v62 }
 0x347   : > { %v1252_v2 = vpack.c.bf16 %v2691_v0, %v2688_v63  ;;  %1598 = vmatpush.bf16.msrb.mxu3 %v2041_v58 }
 0x348   : > { %v1217_v46 = vmul.f32 0.5, %v1208_v1  ;;  %v2164_v5 = vpop.eup %2163  ;;  %v2040_v1 = vld [vmem:[%s2776_s15 + $0x20] sm:$0xff] }
 0x349   : > { %1340 = vmatmul.bf16.gmra.mxu1 %v1252_v2  ;;  %v1232_v6 = vadd.f32 1.0, %v2164_v5 }
 0x34a   : > { %2165 = vtanh.f32 %v1217_v46 }
 0x34b   : > { %v1240_v7 = vmul.f32 %v1232_v6, %v1216_v57  ;;  %1599 = vmatpush.bf16.msrb.mxu3 %v2040_v1 }
 0x34d   : > { %v2697_v52 = vadd.f32 %v1240_v7, %v2649_v42 }
 0x350   : > { %v2166_v47 = vpop.eup %2165 }
 0x351   : > { %v1233_v51 = vadd.f32 1.0, %v2166_v47  ;;  %v2039_v47 = vld [vmem:[%s2776_s15 + $0x18] sm:$0xff] }
 0x352   : > { %1600 = vmatpush.bf16.msrb.mxu3 %v2039_v47 }
 0x353   : > { %v1241_v8 = vmul.f32 %v1233_v51, %v1217_v46 }
 0x355   : > { %v2700_v3 = vadd.f32 %v1241_v8, %v2652_v60 }
 0x357   : > { %v1253_v9 = vpack.c.bf16 %v2700_v3, %v2697_v52 }
 0x359   : > { %1345 = vmatmul.bf16.gmra.mxu1 %v1253_v9 }
 0x3a6   : > { %v1331_v16 = vpop.f32.mrf.mxu1 }
 0x3a7   : > { %v1332_v42 = vadd.f32 %v2100_v15, %v1331_v16 }
 0x3a9   : > { %v1351_v17 = vmul.f32 0.5, %v1332_v42 }
 0x3ab   : > { %2167 = vtanh.f32 %v1351_v17 }
 0x3ae   : > { %v1333_v18 = vpop.f32.mrf.mxu1 }
 0x3af   : > { %v1334_v60 = vadd.f32 %v2100_v15, %v1333_v18  ;;  %v2036_v18 = vld [vmem:[%s2776_s15] sm:$0xff] }
 0x3b1   : > { %v1352_v19 = vmul.f32 0.5, %v1334_v60  ;;  %v2168_v20 = vpop.eup %2167  ;;  %v2101_v60 = vld [vmem:[%s2793_s29] ss:$0 sm:$0xff] }
 0x3b2   : > { %v1367_v23 = vadd.f32 1.0, %v2168_v20 }
 0x3b3   : > { %2169 = vtanh.f32 %v1352_v19 }
 0x3b4   : > { %v1375_v31 = vmul.f32 %v1367_v23, %v1351_v17  ;;  %v2038_v17 = vld [vmem:[%s2776_s15 + $0x10] sm:$0xff] }
 0x3b5   : > { %1601 = vmatpush.bf16.msrb.mxu3 %v2038_v17 }
 0x3b6   : > { %v1336_v21 = vpop.f32.mrf.mxu1 }
 0x3b7   : > { %v1337_v22 = vadd.f32 %v2100_v15, %v1336_v21 }
 0x3b9   : > { %v2170_v25 = vpop.eup %2169  ;;  %v1353_v28 = vmul.f32 0.5, %v1337_v22 }
 0x3ba   : > { %v1368_v30 = vadd.f32 1.0, %v2170_v25 }
 0x3bb   : > { %2171 = vtanh.f32 %v1353_v28 }
 0x3bc   : > { %v1376_v32 = vmul.f32 %v1368_v30, %v1352_v19 }
 0x3be   : > { %v1338_v33 = vpop.f32.mrf.mxu1  ;;  %v1383_v36 = vpack.c.bf16 %v1376_v32, %v1375_v31 }
 0x3bf   : > { %v1339_v37 = vadd.f32 %v2100_v15, %v1338_v33 }
 0x3c0   : > { %1463 = vmatmul.bf16.vlgmr.msrb.gmra.mxu2 %v1383_v36 }
 0x3c1   : > { %v1354_v38 = vmul.f32 0.5, %v1339_v37  ;;  %v2172_v13 = vpop.eup %2171 }
 0x3c2   : > { %v1369_v14 = vadd.f32 1.0, %v2172_v13 }
 0x3c3   : > { %2173 = vtanh.f32 %v1354_v38 }
 0x3c4   : > { %v1377_v48 = vmul.f32 %v1369_v14, %v1353_v28 }
 0x3c6   : > { %v1341_v39 = vpop.f32.mrf.mxu1 }
 0x3c7   : > { %v1342_v34 = vadd.f32 %v2100_v15, %v1341_v39 }
 0x3c9   : > { %v2174_v40 = vpop.eup %2173  ;;  %v1355_v45 = vmul.f32 0.5, %v1342_v34 }
 0x3ca   : > { %v1370_v44 = vadd.f32 1.0, %v2174_v40 }
 0x3cb   : > { %2175 = vtanh.f32 %v1355_v45 }
 0x3cc   : > { %v1378_v49 = vmul.f32 %v1370_v44, %v1354_v38 }
 0x3ce   : > { %v1343_v50 = vpop.f32.mrf.mxu1  ;;  %v1384_v53 = vpack.c.bf16 %v1378_v49, %v1377_v48 }
 0x3cf   : > { %v1344_v54 = vadd.f32 %v2100_v15, %v1343_v50 }
 0x3d0   : > { %1468 = vmatmul.bf16.gmra.mxu2 %v1384_v53 }
 0x3d1   : > { %v1356_v26 = vmul.f32 0.5, %v1344_v54  ;;  %v2176_v27 = vpop.eup %2175 }
 0x3d2   : > { %v1371_v61 = vadd.f32 1.0, %v2176_v27 }
 0x3d3   : > { %2177 = vtanh.f32 %v1356_v26 }
 0x3d4   : > { %v1379_v4 = vmul.f32 %v1371_v61, %v1355_v45 }
 0x3d6   : > { %v1346_v57 = vpop.f32.mrf.mxu1 }
 0x3d7   : > { %v1347_v59 = vadd.f32 %v2100_v15, %v1346_v57 }
 0x3d9   : > { %v2178_v41 = vpop.eup %2177  ;;  %v1357_v2 = vmul.f32 0.5, %v1347_v59 }
 0x3da   : > { %v1372_v62 = vadd.f32 1.0, %v2178_v41 }
 0x3db   : > { %2179 = vtanh.f32 %v1357_v2 }
 0x3dc   : > { %v1380_v46 = vmul.f32 %v1372_v62, %v1356_v26 }
 0x3de   : > { %v1348_v5 = vpop.f32.mrf.mxu1  ;;  %v1385_v6 = vpack.c.bf16 %v1380_v46, %v1379_v4 }
 0x3df   : > { %v1349_v7 = vadd.f32 %v2100_v15, %v1348_v5  ;;  %v2037_v15 = vld [vmem:[%s2776_s15 + $0x8] sm:$0xff] }
 0x3e0   : > { %1473 = vmatmul.bf16.gmra.mxu2 %v1385_v6  ;;  %1602 = vmatpush.bf16.msrb.mxu3 %v2037_v15 }
 0x3e1   : > { %v1358_v51 = vmul.f32 0.5, %v1349_v7  ;;  %v2180_v8 = vpop.eup %2179 }
 0x3e2   : > { %v1373_v9 = vadd.f32 1.0, %v2180_v8 }
 0x3e3   : > { %2181 = vtanh.f32 %v1358_v51 }
 0x3e4   : > { %v1381_v12 = vmul.f32 %v1373_v9, %v1357_v2  ;;  %1603 = vmatpush.bf16.msrb.mxu3 %v2036_v18 }
 0x3e9   : > { %v2182_v10 = vpop.eup %2181 }
 0x3ea   : > { %v1374_v11 = vadd.f32 1.0, %v2182_v10 }
 0x3ec   : > { %v1382_v16 = vmul.f32 %v1374_v11, %v1358_v51 }
 0x3ee   : > { %v1386_v42 = vpack.c.bf16 %v1382_v16, %v1381_v12 }
 0x3f0   : > { %1478 = vmatmul.bf16.gmra.mxu2 %v1386_v42 }
 0x443   : > { %v1464_v19 = vpop.f32.mrf.mxu2 }
 0x444   : > { %v1465_v20 = vadd.f32 %v2101_v60, %v1464_v19 }
 0x446   : > { %v1484_v21 = vmul.f32 0.5, %v1465_v20 }
 0x448   : > { %2183 = vtanh.f32 %v1484_v21 }
 0x44b   : > { %v1466_v22 = vpop.f32.mrf.mxu2 }
 0x44c   : > { %v1467_v23 = vadd.f32 %v2101_v60, %v1466_v22 }
 0x44e   : > { %v1485_v25 = vmul.f32 0.5, %v1467_v23  ;;  %v2184_v30 = vpop.eup %2183 }
 0x44f   : > { %v1500_v28 = vadd.f32 1.0, %v2184_v30 }
 0x450   : > { %2185 = vtanh.f32 %v1485_v25 }
 0x451   : > { %v1508_v37 = vmul.f32 %v1500_v28, %v1484_v21 }
 0x453   : > { %v1469_v31 = vpop.f32.mrf.mxu2  ;;  %v1516_v39 = vadd.f32 %v1508_v37, %v2668_v29 }
 0x454   : > { %v1470_v32 = vadd.f32 %v2101_v60, %v1469_v31 }
 0x456   : > { %v2186_v33 = vpop.eup %2185  ;;  %v1486_v36 = vmul.f32 0.5, %v1470_v32 }
 0x457   : > { %v1501_v38 = vadd.f32 1.0, %v2186_v33 }
 0x458   : > { %2187 = vtanh.f32 %v1486_v36 }
 0x459   : > { %v1509_v13 = vmul.f32 %v1501_v38, %v1485_v25 }
 0x45b   : > { %v1517_v34 = vadd.f32 %v1509_v13, %v2671_v24  ;;  %v1471_v14 = vpop.f32.mrf.mxu2 }
 0x45c   : > { %v1472_v40 = vadd.f32 %v2101_v60, %v1471_v14 }
 0x45d   : > { %v1524_v44 = vpack.c.bf16 %v1517_v34, %v1516_v39 }
 0x45e   : > { %v1487_v45 = vmul.f32 0.5, %v1472_v40  ;;  %v2188_v48 = vpop.eup %2187 }
 0x45f   : > { %1604 = vmatmul.bf16.vlgmr.msrb.gmra.mxu3 %v1524_v44  ;;  %v1502_v49 = vadd.f32 1.0, %v2188_v48 }
 0x460   : > { %2189 = vtanh.f32 %v1487_v45 }
 0x461   : > { %v1510_v26 = vmul.f32 %v1502_v49, %v1486_v36 }
 0x463   : > { %v1474_v50 = vpop.f32.mrf.mxu2  ;;  %v1518_v29 = vadd.f32 %v1510_v26, %v2678_v35 }
 0x464   : > { %v1475_v53 = vadd.f32 %v2101_v60, %v1474_v50 }
 0x466   : > { %v2190_v54 = vpop.eup %2189  ;;  %v1488_v55 = vmul.f32 0.5, %v1475_v53 }
 0x467   : > { %v1503_v56 = vadd.f32 1.0, %v2190_v54 }
 0x468   : > { %2191 = vtanh.f32 %v1488_v55 }
 0x469   : > { %v1511_v27 = vmul.f32 %v1503_v56, %v1487_v45 }
 0x46b   : > { %v1476_v57 = vpop.f32.mrf.mxu2  ;;  %v1519_v24 = vadd.f32 %v1511_v27, %v2681_v43 }
 0x46c   : > { %v1477_v58 = vadd.f32 %v2101_v60, %v1476_v57 }
 0x46d   : > { %v1525_v59 = vpack.c.bf16 %v1519_v24, %v1518_v29 }
 0x46e   : > { %v1489_v61 = vmul.f32 0.5, %v1477_v58  ;;  %v2192_v41 = vpop.eup %2191 }
 0x46f   : > { %1609 = vmatmul.bf16.gmra.mxu3 %v1525_v59  ;;  %v1504_v62 = vadd.f32 1.0, %v2192_v41 }
 0x470   : > { %2193 = vtanh.f32 %v1489_v61 }
 0x471   : > { %v1512_v5 = vmul.f32 %v1504_v62, %v1488_v55 }
 0x473   : > { %v1479_v1 = vpop.f32.mrf.mxu2  ;;  %v1520_v35 = vadd.f32 %v1512_v5, %v2688_v63  ;;  %v2102_v63 = vld [vmem:[%s2794_s21] ss:$0 sm:$0xff] }
 0x474   : > { %v1480_v2 = vadd.f32 %v2101_v60, %v1479_v1 }
 0x476   : > { %v2194_v4 = vpop.eup %2193  ;;  %v1490_v46 = vmul.f32 0.5, %v1480_v2 }
 0x477   : > { %v1505_v6 = vadd.f32 1.0, %v2194_v4 }
 0x478   : > { %2195 = vtanh.f32 %v1490_v46 }
 0x479   : > { %v1513_v47 = vmul.f32 %v1505_v6, %v1489_v61 }
 0x47b   : > { %v1481_v7 = vpop.f32.mrf.mxu2  ;;  %v1521_v43 = vadd.f32 %v1513_v47, %v2691_v0 }
 0x47c   : > { %v1482_v51 = vadd.f32 %v2101_v60, %v1481_v7 }
 0x47d   : > { %v1526_v8 = vpack.c.bf16 %v1521_v43, %v1520_v35 }
 0x47e   : > { %v1491_v9 = vmul.f32 0.5, %v1482_v51  ;;  %v2196_v10 = vpop.eup %2195 }
 0x47f   : > { %1614 = vmatmul.bf16.gmra.mxu3 %v1526_v8  ;;  %v1506_v11 = vadd.f32 1.0, %v2196_v10 }
 0x480   : > { %2197 = vtanh.f32 %v1491_v9 }
 0x481   : > { %v1514_v16 = vmul.f32 %v1506_v11, %v1490_v46 }
 0x483   : > { %v1522_v15 = vadd.f32 %v1514_v16, %v2697_v52 }
 0x486   : > { %v2198_v12 = vpop.eup %2197 }
 0x487   : > { %v1507_v42 = vadd.f32 1.0, %v2198_v12 }
 0x489   : > { %v1515_v17 = vmul.f32 %v1507_v42, %v1491_v9 }
 0x48b   : > { %v1523_v18 = vadd.f32 %v1515_v17, %v2700_v3 }
 0x48d   : > { %v1527_v19 = vpack.c.bf16 %v1523_v18, %v1522_v15 }
 0x48f   : > { %1619 = vmatmul.bf16.gmra.mxu3 %v1527_v19 }
 0x4e2   : > { %v1605_v0 = vpop.f32.mrf.mxu3 }
 0x4e3   : > { %v1606_v60 = vadd.f32 %v2102_v63, %v1605_v0 }
 0x4e5   : > { %1626 = vst.msk [vmem:[%s617_s30] sm:$0xff] %vm1625_vm2, %v1606_v60 }
 0x4ea   : > { %v1607_v20 = vpop.f32.mrf.mxu3 }
 0x4eb   : > { %v1608_v52 = vadd.f32 %v2102_v63, %v1607_v20 }
 0x4ed   : > { %1627 = vst.msk [vmem:[%s617_s30 + $0x8] sm:$0xff] %vm1625_vm2, %v1608_v52 }
 0x4f2   : > { %v1610_v3 = vpop.f32.mrf.mxu3 }
 0x4f3   : > { %v1611_v21 = vadd.f32 %v2102_v63, %v1610_v3 }
 0x4f5   : > { %1628 = vst.msk [vmem:[%s617_s30 + $0x10] sm:$0xff] %vm1625_vm2, %v1611_v21 }
 0x4fa   : > { %v1612_v22 = vpop.f32.mrf.mxu3 }
 0x4fb   : > { %v1613_v23 = vadd.f32 %v2102_v63, %v1612_v22 }
 0x4fd   : > { %1629 = vst.msk [vmem:[%s617_s30 + $0x18] sm:$0xff] %vm1625_vm2, %v1613_v23 }
 0x502   : > { %v1615_v25 = vpop.f32.mrf.mxu3 }
 0x503   : > { %v1616_v30 = vadd.f32 %v2102_v63, %v1615_v25 }
 0x505   : > { %1630 = vst.msk [vmem:[%s617_s30 + $0x20] sm:$0xff] %vm1625_vm2, %v1616_v30 }
 0x50a   : > { %v1617_v28 = vpop.f32.mrf.mxu3 }
 0x50b   : > { %v1618_v31 = vadd.f32 %v2102_v63, %v1617_v28 }
 0x50d   : > { %1631 = vst.msk [vmem:[%s617_s30 + $0x28] sm:$0xff] %vm1625_vm2, %v1618_v31 }
 0x512   : > { %v1620_v32 = vpop.f32.mrf.mxu3 }
 0x513   : > { %v1621_v33 = vadd.f32 %v2102_v63, %v1620_v32 }
 0x515   : > { %1632 = vst.msk [vmem:[%s617_s30 + $0x30] sm:$0xff] %vm1625_vm2, %v1621_v33 }
 0x51a   : > { %v1622_v36 = vpop.f32.mrf.mxu3 }
 0x51b   : > { %v1623_v37 = vadd.f32 %v2102_v63, %v1622_v36 }
 0x51d   : > { %1633 = vst.msk [vmem:[%s617_s30 + $0x38] sm:$0xff] %vm1625_vm2, %v1623_v37 }
 0x51e PF: > { %s30_s24 = sadd.s32 1, %s2337_s24  }
 0x51f   : > { %p27_p7 = scmp.ge.s32.totalorder %s30_s24, 4  }
 0x521   :  { %29 = sbr.rel (!%p27_p7) target bundleno = 10 (0xa), region = 135 }
 0x526   :  { %1656 = vsyncpa [#allocation3], 1 }
 0x527   :  { %1658 = vsyncpa [#allocation3 + $0x1], 1 }
 0x528   :  { %1659 = vsyncpa [#allocation5], 1 }
 0x529   :  { %1660 = vsyncpa [#allocation8], 1 }

</bundles_post_ra>
